<compile_context>
chip_gen: v5e
topology: v5e:2x2
jax: 0.10.0
libtpu: 0.0.40
codegen_flags: <defaults>
</compile_context>

<pallas_src>
import functools

import jax
import jax.numpy as jnp
from jax.experimental import pallas as pl
from jax.experimental.pallas import tpu as pltpu


def _rish(x):
    # TODO(synk): `Rish` assumed to be Mish: x * tanh(softplus(x)).
    # Exact single-exp rewrite: t = exp(x); n = t*(t+2); mish(x) = x*n/(n+2).
    # Clamp before exp so n stays finite in f32; for x >= 20 the ratio is 1.0
    # to f32 precision, so the clamp does not change the result.
    t = jnp.exp(jnp.minimum(x, 20.0))
    n = t * (t + 2.0)
    return x * n / (n + 2.0)


def _vae_kernel(x_ref,
                w1_ref, b1_ref, w2_ref, b2_ref,
                wmulv_ref, bmulv_ref,
                wu1_ref, bu1_ref, wu2_ref, bu2_ref,
                wo_ref, bo_ref,
                out_ref, *, latent_dim):
    x = x_ref[...]                                   # [S, TB] -- batch on lanes

    # ---- encoder (h = rish(W @ x + b), activations [feat, TB]) ----
    h = _rish(jnp.dot(w1_ref[...], x, preferred_element_type=jnp.float32) + b1_ref[...])
    h = _rish(jnp.dot(w2_ref[...], h, preferred_element_type=jnp.float32) + b2_ref[...])
    # fused mu|logvar projection: one MXU push on the shared activation h
    mulv = jnp.dot(wmulv_ref[...], h, preferred_element_type=jnp.float32) + bmulv_ref[...]
    mu = mulv[:latent_dim, :]                        # sublane-aligned slice (L % 8 == 0)
    logvar = mulv[latent_dim:, :]

    # ---- reparameterization (exactly as the reference: uses mu, not eps) ----
    z = mu + jnp.exp(0.5 * logvar) * mu

    # ---- decoder ----
    d = _rish(jnp.dot(wu1_ref[...], z, preferred_element_type=jnp.float32) + bu1_ref[...])
    d = _rish(jnp.dot(wu2_ref[...], d, preferred_element_type=jnp.float32) + bu2_ref[...])
    recon = jnp.dot(wo_ref[...], d, preferred_element_type=jnp.float32) + bo_ref[...]

    # ---- single full-block, lane-dense store: [ recon ; mu ; logvar ] ----
    out_ref[...] = jnp.concatenate([recon, mulv], axis=0).astype(out_ref.dtype)


def init_vae_params(key, state_dim, latent_dim):
    """PyTorch-native layout & init: weights [out, in] ~ kaiming_normal_
    (fan_in, relu gain -> std = sqrt(2/fan_in)); biases [out, 1] ~ default
    nn.Linear uniform(-1/sqrt(fan_in), 1/sqrt(fan_in))."""
    h1 = (state_dim + latent_dim) * 2 // 3
    h2 = (state_dim + latent_dim) * 1 // 3
    dims = [
        (state_dim, h1),   # down1
        (h1, h2),          # down2
        (h2, latent_dim),  # mu
        (h2, latent_dim),  # logvar
        (latent_dim, h2),  # up1
        (h2, h1),          # up2
        (h1, state_dim),   # out
    ]
    params = []
    for fan_in, fan_out in dims:
        key, kw, kb = jax.random.split(key, 3)
        std = (2.0 / fan_in) ** 0.5
        w = jax.random.normal(kw, (fan_out, fan_in), jnp.float32) * std      # [out, in]
        bound = 1.0 / (fan_in ** 0.5)
        b = jax.random.uniform(kb, (fan_out, 1), jnp.float32, -bound, bound)  # [out, 1]
        params.append((w, b))
    return params


def prepare_params(params):
    """One-time parameter prep (outside the per-call jit): fuse the mu and
    logvar projections into a single [2L, h2] weight / [2L, 1] bias."""
    (w1, b1), (w2, b2), (wmu, bmu), (wlv, blv), (wu1, bu1), (wu2, bu2), (wo, bo) = params
    wmulv = jnp.concatenate([wmu, wlv], axis=0)
    bmulv = jnp.concatenate([bmu, blv], axis=0)
    return (w1, b1, w2, b2, wmulv, bmulv, wu1, bu1, wu2, bu2, wo, bo)


def _pick_batch_tile(B):
    """Batch tile = lane dim of every block.
    Small / oddly-sized batches: one tile (grid overhead dominates otherwise).
    Large lane-divisible batches: biggest multiple of 128 that divides B,
    <= 1024, and yields >= 2 grid steps (keeps both v7x TensorCores busy)."""
    if B <= 128 or B % 128 != 0:
        return B
    for tb in (1024, 512, 256, 128):
        if tb <= B // 2 and B % tb == 0:
            return tb
    return B


@jax.jit
def vae_forward(x, flat_params):
    B, S = x.shape
    w1, b1, w2, b2, wmulv, bmulv, wu1, bu1, wu2, bu2, wo, bo = flat_params
    L = wmulv.shape[0] // 2
    W_out = S + 2 * L

    # Feature-major view of the input: [S, B] (batch on lanes).
    x_t = x.T

    TB = _pick_batch_tile(B)
    grid = (pl.cdiv(B, TB),)

    # Tiny weights/biases stay VMEM-resident (constant block index -> fetched
    # once; double-buffer overhead on them is negligible, ~100 KB total).
    def resident(p):
        return pl.BlockSpec(p.shape, lambda i: (0, 0))

    in_specs = ([pl.BlockSpec((S, TB), lambda i: (0, i))]
                + [resident(p) for p in flat_params])
    out_specs = pl.BlockSpec((W_out, TB), lambda i: (0, i))

    # Advisory cost hint so XLA schedules neighbors around this small call.
    weight_shapes = [w1.shape, w2.shape, wmulv.shape, wu1.shape, wu2.shape, wo.shape]
    flops = 2 * B * sum(int(o) * int(i) for o, i in weight_shapes)
    transcendentals = B * (w1.shape[0] + w2.shape[0] + wu1.shape[0] + wu2.shape[0] + L)
    bytes_accessed = 4 * (x.size + B * W_out + sum(int(p.size) for p in flat_params))

    packed = pl.pallas_call(
        functools.partial(_vae_kernel, latent_dim=L),
        out_shape=jax.ShapeDtypeStruct((W_out, B), jnp.float32),
        grid=grid,
        in_specs=in_specs,
        out_specs=out_specs,
        compiler_params=pltpu.CompilerParams(dimension_semantics=("parallel",)),
        cost_estimate=pl.CostEstimate(flops=flops,
                                      transcendentals=transcendentals,
                                      bytes_accessed=bytes_accessed),
    )(x_t, *flat_params)

    # Layout plumbing back to [B, feat] for the caller.
    recon = packed[:S, :].T
    mu = packed[S:S + L, :].T
    logvar = packed[S + L:, :].T
    return recon, mu, logvar


if __name__ == "__main__":
    state_dim, latent_dim = 16, 8   # (16 + 8) divisible by 3 -> h1=16, h2=8
    batch = 8

    key = jax.random.PRNGKey(0)
    kx, keps, kp = jax.random.split(key, 3)

    x = jax.random.normal(kx, (batch, state_dim), jnp.float32)
    params = init_vae_params(kp, state_dim, latent_dim)
    flat_params = prepare_params(params)

    recon, mu, logvar = vae_forward(x, flat_params)
    # eps = torch.randn_like(mu): generated but unused by the reference compute.
    eps = jax.random.normal(keps, mu.shape, mu.dtype)

    out = (recon, mu, logvar, eps)
    jax.block_until_ready(out)
    print("KERNEL_OK")
</pallas_src>

<mosaic_0001>
module attributes {stable_mosaic.version = 11 : i64} {
  func.func @_vae_kernel(%arg0: i32, %arg1: memref<16x8xf32, #tpu.memory_space<vmem>>, %arg2: memref<16x16xf32, #tpu.memory_space<vmem>>, %arg3: memref<16x1xf32, #tpu.memory_space<vmem>>, %arg4: memref<8x16xf32, #tpu.memory_space<vmem>>, %arg5: memref<8x1xf32, #tpu.memory_space<vmem>>, %arg6: memref<16x8xf32, #tpu.memory_space<vmem>>, %arg7: memref<16x1xf32, #tpu.memory_space<vmem>>, %arg8: memref<8x8xf32, #tpu.memory_space<vmem>>, %arg9: memref<8x1xf32, #tpu.memory_space<vmem>>, %arg10: memref<16x8xf32, #tpu.memory_space<vmem>>, %arg11: memref<16x1xf32, #tpu.memory_space<vmem>>, %arg12: memref<16x16xf32, #tpu.memory_space<vmem>>, %arg13: memref<16x1xf32, #tpu.memory_space<vmem>>, %arg14: memref<32x8xf32, #tpu.memory_space<vmem>>) attributes {dimension_semantics = [#tpu.dimension_semantics<parallel>], iteration_bounds = array<i64: 1>, scalar_prefetch = 0 : i64, scratch_operands = 0 : i64, tpu.core_type = #tpu.core_type<tc>, window_params = [{transform_indices = @transform_0, window_bounds = array<i64: 16, 8>}, {pipeline_mode = #tpu.pipeline_mode<synchronous>, transform_indices = @transform_1, window_bounds = array<i64: 16, 16>}, {pipeline_mode = #tpu.pipeline_mode<synchronous>, transform_indices = @transform_2, window_bounds = array<i64: 16, 1>}, {pipeline_mode = #tpu.pipeline_mode<synchronous>, transform_indices = @transform_3, window_bounds = array<i64: 8, 16>}, {pipeline_mode = #tpu.pipeline_mode<synchronous>, transform_indices = @transform_4, window_bounds = array<i64: 8, 1>}, {pipeline_mode = #tpu.pipeline_mode<synchronous>, transform_indices = @transform_5, window_bounds = array<i64: 16, 8>}, {pipeline_mode = #tpu.pipeline_mode<synchronous>, transform_indices = @transform_6, window_bounds = array<i64: 16, 1>}, {pipeline_mode = #tpu.pipeline_mode<synchronous>, transform_indices = @transform_7, window_bounds = array<i64: 8, 8>}, {pipeline_mode = #tpu.pipeline_mode<synchronous>, transform_indices = @transform_8, window_bounds = array<i64: 8, 1>}, {pipeline_mode = #tpu.pipeline_mode<synchronous>, transform_indices = @transform_9, window_bounds = array<i64: 16, 8>}, {pipeline_mode = #tpu.pipeline_mode<synchronous>, transform_indices = @transform_10, window_bounds = array<i64: 16, 1>}, {pipeline_mode = #tpu.pipeline_mode<synchronous>, transform_indices = @transform_11, window_bounds = array<i64: 16, 16>}, {pipeline_mode = #tpu.pipeline_mode<synchronous>, transform_indices = @transform_12, window_bounds = array<i64: 16, 1>}, {transform_indices = @transform_13, window_bounds = array<i64: 32, 8>}]} {
    %c0 = arith.constant 0 : index
    %c0_0 = arith.constant 0 : index
    %0 = vector.load %arg1[%c0, %c0_0] : memref<16x8xf32, #tpu.memory_space<vmem>>, vector<16x8xf32>
    %c0_1 = arith.constant 0 : index
    %c0_2 = arith.constant 0 : index
    %1 = vector.load %arg2[%c0_1, %c0_2] : memref<16x16xf32, #tpu.memory_space<vmem>>, vector<16x16xf32>
    %cst = arith.constant dense<0.000000e+00> : vector<16x8xf32>
    %2 = tpu.matmul %1, %0, %cst {dimension_numbers = #tpu.dot_dimension_numbers<[1], [0], [0], [1], [0, 0, 1, 1], [], []>} : vector<16x16xf32>, vector<16x8xf32>, vector<16x8xf32> -> vector<16x8xf32>
    %c0_3 = arith.constant 0 : index
    %c0_4 = arith.constant 0 : index
    %3 = vector.load %arg3[%c0_3, %c0_4] : memref<16x1xf32, #tpu.memory_space<vmem>>, vector<16x1xf32>
    %4 = vector.broadcast %3 : vector<16x1xf32> to vector<16x8xf32>
    %5 = arith.addf %2, %4 : vector<16x8xf32>
    %cst_5 = arith.constant 2.000000e+01 : f32
    %6 = vector.broadcast %cst_5 : f32 to vector<16x8xf32>
    %7 = arith.minimumf %5, %6 : vector<16x8xf32>
    %8 = math.exp %7 : vector<16x8xf32>
    %cst_6 = arith.constant 2.000000e+00 : f32
    %9 = vector.broadcast %cst_6 : f32 to vector<16x8xf32>
    %10 = arith.addf %8, %9 : vector<16x8xf32>
    %11 = arith.mulf %8, %10 : vector<16x8xf32>
    %12 = arith.mulf %5, %11 : vector<16x8xf32>
    %cst_7 = arith.constant 2.000000e+00 : f32
    %13 = vector.broadcast %cst_7 : f32 to vector<16x8xf32>
    %14 = arith.addf %11, %13 : vector<16x8xf32>
    %15 = arith.divf %12, %14 : vector<16x8xf32>
    %c0_8 = arith.constant 0 : index
    %c0_9 = arith.constant 0 : index
    %16 = vector.load %arg4[%c0_8, %c0_9] : memref<8x16xf32, #tpu.memory_space<vmem>>, vector<8x16xf32>
    %cst_10 = arith.constant dense<0.000000e+00> : vector<8x8xf32>
    %17 = tpu.matmul %16, %15, %cst_10 {dimension_numbers = #tpu.dot_dimension_numbers<[1], [0], [0], [1], [0, 0, 1, 1], [], []>} : vector<8x16xf32>, vector<16x8xf32>, vector<8x8xf32> -> vector<8x8xf32>
    %c0_11 = arith.constant 0 : index
    %c0_12 = arith.constant 0 : index
    %18 = vector.load %arg5[%c0_11, %c0_12] : memref<8x1xf32, #tpu.memory_space<vmem>>, vector<8x1xf32>
    %19 = vector.broadcast %18 : vector<8x1xf32> to vector<8x8xf32>
    %20 = arith.addf %17, %19 : vector<8x8xf32>
    %cst_13 = arith.constant 2.000000e+01 : f32
    %21 = vector.broadcast %cst_13 : f32 to vector<8x8xf32>
    %22 = arith.minimumf %20, %21 : vector<8x8xf32>
    %23 = math.exp %22 : vector<8x8xf32>
    %cst_14 = arith.constant 2.000000e+00 : f32
    %24 = vector.broadcast %cst_14 : f32 to vector<8x8xf32>
    %25 = arith.addf %23, %24 : vector<8x8xf32>
    %26 = arith.mulf %23, %25 : vector<8x8xf32>
    %27 = arith.mulf %20, %26 : vector<8x8xf32>
    %cst_15 = arith.constant 2.000000e+00 : f32
    %28 = vector.broadcast %cst_15 : f32 to vector<8x8xf32>
    %29 = arith.addf %26, %28 : vector<8x8xf32>
    %30 = arith.divf %27, %29 : vector<8x8xf32>
    %c0_16 = arith.constant 0 : index
    %c0_17 = arith.constant 0 : index
    %31 = vector.load %arg6[%c0_16, %c0_17] : memref<16x8xf32, #tpu.memory_space<vmem>>, vector<16x8xf32>
    %cst_18 = arith.constant dense<0.000000e+00> : vector<16x8xf32>
    %32 = tpu.matmul %31, %30, %cst_18 {dimension_numbers = #tpu.dot_dimension_numbers<[1], [0], [0], [1], [0, 0, 1, 1], [], []>} : vector<16x8xf32>, vector<8x8xf32>, vector<16x8xf32> -> vector<16x8xf32>
    %c0_19 = arith.constant 0 : index
    %c0_20 = arith.constant 0 : index
    %33 = vector.load %arg7[%c0_19, %c0_20] : memref<16x1xf32, #tpu.memory_space<vmem>>, vector<16x1xf32>
    %34 = vector.broadcast %33 : vector<16x1xf32> to vector<16x8xf32>
    %35 = arith.addf %32, %34 : vector<16x8xf32>
    %36 = vector.extract_strided_slice %35 {offsets = [0, 0], sizes = [8, 8], strides = [1, 1]} : vector<16x8xf32> to vector<8x8xf32>
    %37 = vector.extract_strided_slice %35 {offsets = [8, 0], sizes = [8, 8], strides = [1, 1]} : vector<16x8xf32> to vector<8x8xf32>
    %cst_21 = arith.constant 5.000000e-01 : f32
    %38 = vector.broadcast %cst_21 : f32 to vector<8x8xf32>
    %39 = arith.mulf %38, %37 : vector<8x8xf32>
    %40 = math.exp %39 : vector<8x8xf32>
    %41 = arith.mulf %40, %36 : vector<8x8xf32>
    %42 = arith.addf %36, %41 : vector<8x8xf32>
    %c0_22 = arith.constant 0 : index
    %c0_23 = arith.constant 0 : index
    %43 = vector.load %arg8[%c0_22, %c0_23] : memref<8x8xf32, #tpu.memory_space<vmem>>, vector<8x8xf32>
    %cst_24 = arith.constant dense<0.000000e+00> : vector<8x8xf32>
    %44 = tpu.matmul %43, %42, %cst_24 {dimension_numbers = #tpu.dot_dimension_numbers<[1], [0], [0], [1], [0, 0, 1, 1], [], []>} : vector<8x8xf32>, vector<8x8xf32>, vector<8x8xf32> -> vector<8x8xf32>
    %c0_25 = arith.constant 0 : index
    %c0_26 = arith.constant 0 : index
    %45 = vector.load %arg9[%c0_25, %c0_26] : memref<8x1xf32, #tpu.memory_space<vmem>>, vector<8x1xf32>
    %46 = vector.broadcast %45 : vector<8x1xf32> to vector<8x8xf32>
    %47 = arith.addf %44, %46 : vector<8x8xf32>
    %cst_27 = arith.constant 2.000000e+01 : f32
    %48 = vector.broadcast %cst_27 : f32 to vector<8x8xf32>
    %49 = arith.minimumf %47, %48 : vector<8x8xf32>
    %50 = math.exp %49 : vector<8x8xf32>
    %cst_28 = arith.constant 2.000000e+00 : f32
    %51 = vector.broadcast %cst_28 : f32 to vector<8x8xf32>
    %52 = arith.addf %50, %51 : vector<8x8xf32>
    %53 = arith.mulf %50, %52 : vector<8x8xf32>
    %54 = arith.mulf %47, %53 : vector<8x8xf32>
    %cst_29 = arith.constant 2.000000e+00 : f32
    %55 = vector.broadcast %cst_29 : f32 to vector<8x8xf32>
    %56 = arith.addf %53, %55 : vector<8x8xf32>
    %57 = arith.divf %54, %56 : vector<8x8xf32>
    %c0_30 = arith.constant 0 : index
    %c0_31 = arith.constant 0 : index
    %58 = vector.load %arg10[%c0_30, %c0_31] : memref<16x8xf32, #tpu.memory_space<vmem>>, vector<16x8xf32>
    %cst_32 = arith.constant dense<0.000000e+00> : vector<16x8xf32>
    %59 = tpu.matmul %58, %57, %cst_32 {dimension_numbers = #tpu.dot_dimension_numbers<[1], [0], [0], [1], [0, 0, 1, 1], [], []>} : vector<16x8xf32>, vector<8x8xf32>, vector<16x8xf32> -> vector<16x8xf32>
    %c0_33 = arith.constant 0 : index
    %c0_34 = arith.constant 0 : index
    %60 = vector.load %arg11[%c0_33, %c0_34] : memref<16x1xf32, #tpu.memory_space<vmem>>, vector<16x1xf32>
    %61 = vector.broadcast %60 : vector<16x1xf32> to vector<16x8xf32>
    %62 = arith.addf %59, %61 : vector<16x8xf32>
    %cst_35 = arith.constant 2.000000e+01 : f32
    %63 = vector.broadcast %cst_35 : f32 to vector<16x8xf32>
    %64 = arith.minimumf %62, %63 : vector<16x8xf32>
    %65 = math.exp %64 : vector<16x8xf32>
    %cst_36 = arith.constant 2.000000e+00 : f32
    %66 = vector.broadcast %cst_36 : f32 to vector<16x8xf32>
    %67 = arith.addf %65, %66 : vector<16x8xf32>
    %68 = arith.mulf %65, %67 : vector<16x8xf32>
    %69 = arith.mulf %62, %68 : vector<16x8xf32>
    %cst_37 = arith.constant 2.000000e+00 : f32
    %70 = vector.broadcast %cst_37 : f32 to vector<16x8xf32>
    %71 = arith.addf %68, %70 : vector<16x8xf32>
    %72 = arith.divf %69, %71 : vector<16x8xf32>
    %c0_38 = arith.constant 0 : index
    %c0_39 = arith.constant 0 : index
    %73 = vector.load %arg12[%c0_38, %c0_39] : memref<16x16xf32, #tpu.memory_space<vmem>>, vector<16x16xf32>
    %cst_40 = arith.constant dense<0.000000e+00> : vector<16x8xf32>
    %74 = tpu.matmul %73, %72, %cst_40 {dimension_numbers = #tpu.dot_dimension_numbers<[1], [0], [0], [1], [0, 0, 1, 1], [], []>} : vector<16x16xf32>, vector<16x8xf32>, vector<16x8xf32> -> vector<16x8xf32>
    %c0_41 = arith.constant 0 : index
    %c0_42 = arith.constant 0 : index
    %75 = vector.load %arg13[%c0_41, %c0_42] : memref<16x1xf32, #tpu.memory_space<vmem>>, vector<16x1xf32>
    %76 = vector.broadcast %75 : vector<16x1xf32> to vector<16x8xf32>
    %77 = arith.addf %74, %76 : vector<16x8xf32>
    %78 = tpu.concatenate %77, %35 in 0 : vector<16x8xf32>, vector<16x8xf32> -> vector<32x8xf32>
    %c0_43 = arith.constant 0 : index
    %c0_44 = arith.constant 0 : index
    %79 = vector.load %arg14[%c0_43, %c0_44] : memref<32x8xf32, #tpu.memory_space<vmem>>, vector<32x8xf32>
    tpu.vector_store %arg14[%c0_43, %c0_44], %78 {strides = array<i32>} : memref<32x8xf32, #tpu.memory_space<vmem>>, vector<32x8xf32>,
    return
  }
  func.func @transform_0(%arg0: i32) -> (i32, i32) {
    %c0_i32 = arith.constant 0 : i32
    %c0_i32_0 = arith.constant 0 : i32
    return %c0_i32, %arg0 : i32, i32
  }
  func.func @transform_1(%arg0: i32) -> (i32, i32) {
    %c0_i32 = arith.constant 0 : i32
    %c0_i32_0 = arith.constant 0 : i32
    %c0_i32_1 = arith.constant 0 : i32
    return %c0_i32, %c0_i32_0 : i32, i32
  }
  func.func @transform_2(%arg0: i32) -> (i32, i32) {
    %c0_i32 = arith.constant 0 : i32
    %c0_i32_0 = arith.constant 0 : i32
    %c0_i32_1 = arith.constant 0 : i32
    return %c0_i32, %c0_i32_0 : i32, i32
  }
  func.func @transform_3(%arg0: i32) -> (i32, i32) {
    %c0_i32 = arith.constant 0 : i32
    %c0_i32_0 = arith.constant 0 : i32
    %c0_i32_1 = arith.constant 0 : i32
    return %c0_i32, %c0_i32_0 : i32, i32
  }
  func.func @transform_4(%arg0: i32) -> (i32, i32) {
    %c0_i32 = arith.constant 0 : i32
    %c0_i32_0 = arith.constant 0 : i32
    %c0_i32_1 = arith.constant 0 : i32
    return %c0_i32, %c0_i32_0 : i32, i32
  }
  func.func @transform_5(%arg0: i32) -> (i32, i32) {
    %c0_i32 = arith.constant 0 : i32
    %c0_i32_0 = arith.constant 0 : i32
    %c0_i32_1 = arith.constant 0 : i32
    return %c0_i32, %c0_i32_0 : i32, i32
  }
  func.func @transform_6(%arg0: i32) -> (i32, i32) {
    %c0_i32 = arith.constant 0 : i32
    %c0_i32_0 = arith.constant 0 : i32
    %c0_i32_1 = arith.constant 0 : i32
    return %c0_i32, %c0_i32_0 : i32, i32
  }
  func.func @transform_7(%arg0: i32) -> (i32, i32) {
    %c0_i32 = arith.constant 0 : i32
    %c0_i32_0 = arith.constant 0 : i32
    %c0_i32_1 = arith.constant 0 : i32
    return %c0_i32, %c0_i32_0 : i32, i32
  }
  func.func @transform_8(%arg0: i32) -> (i32, i32) {
    %c0_i32 = arith.constant 0 : i32
    %c0_i32_0 = arith.constant 0 : i32
    %c0_i32_1 = arith.constant 0 : i32
    return %c0_i32, %c0_i32_0 : i32, i32
  }
  func.func @transform_9(%arg0: i32) -> (i32, i32) {
    %c0_i32 = arith.constant 0 : i32
    %c0_i32_0 = arith.constant 0 : i32
    %c0_i32_1 = arith.constant 0 : i32
    return %c0_i32, %c0_i32_0 : i32, i32
  }
  func.func @transform_10(%arg0: i32) -> (i32, i32) {
    %c0_i32 = arith.constant 0 : i32
    %c0_i32_0 = arith.constant 0 : i32
    %c0_i32_1 = arith.constant 0 : i32
    return %c0_i32, %c0_i32_0 : i32, i32
  }
  func.func @transform_11(%arg0: i32) -> (i32, i32) {
    %c0_i32 = arith.constant 0 : i32
    %c0_i32_0 = arith.constant 0 : i32
    %c0_i32_1 = arith.constant 0 : i32
    return %c0_i32, %c0_i32_0 : i32, i32
  }
  func.func @transform_12(%arg0: i32) -> (i32, i32) {
    %c0_i32 = arith.constant 0 : i32
    %c0_i32_0 = arith.constant 0 : i32
    %c0_i32_1 = arith.constant 0 : i32
    return %c0_i32, %c0_i32_0 : i32, i32
  }
  func.func @transform_13(%arg0: i32) -> (i32, i32) {
    %c0_i32 = arith.constant 0 : i32
    %c0_i32_0 = arith.constant 0 : i32
    return %c0_i32, %arg0 : i32, i32
  }
}

</mosaic_0001>

<bundles_post_ra>
// kernel: vae_forward.1
= control target key start
LH: loop header
LB: loop body
LE: loop exit
PB: predicated region body
PF: predicated region fallthrough
CT: control target
= control target key end

     0   :  { %v467_v0 = vmov 0   ;;  %vm60_vm0 = vcmask 130048   ;;  %vm200_vm13 = vcmask 64512   ;;  %s630_s2 = inlined_call_operand.vmem [shape: f32[16,1], index: 2, kind: input, shape index: {}]   ;;  %s631_s0 = inlined_call_operand.vmem [shape: f32[16,8], index: 0, kind: input, shape index: {}]   ;;  %s632_s1 = inlined_call_operand.vmem [shape: f32[16,16], index: 1, kind: input, shape index: {}]   ;;  %s633_s10 = inlined_call_operand.vmem [shape: f32[16,1], index: 10, kind: input, shape index: {}]   ;;  %s634_s12 = inlined_call_operand.vmem [shape: f32[16,1], index: 12, kind: input, shape index: {}]   ;;  %s635_s4 = inlined_call_operand.vmem [shape: f32[8,1], index: 4, kind: input, shape index: {}]   ;;  %s636_s6 = inlined_call_operand.vmem [shape: f32[16,1], index: 6, kind: input, shape index: {}]   ;;  %s637_s3 = inlined_call_operand.vmem [shape: f32[8,16], index: 3, kind: input, shape index: {}]   ;;  %s638_s8 = inlined_call_operand.vmem [shape: f32[8,1], index: 8, kind: input, shape index: {}]   ;;  %s639_s5 = inlined_call_operand.vmem [shape: f32[16,8], index: 5, kind: input, shape index: {}]   ;;  %s640_s13 = inlined_call_operand.vmem [shape: f32[32,8], index: 13, kind: output, shape index: {}]   ;;  %s641_s7 = inlined_call_operand.vmem [shape: f32[8,8], index: 7, kind: input, shape index: {}]   ;;  %s642_s9 = inlined_call_operand.vmem [shape: f32[16,8], index: 9, kind: input, shape index: {}]   ;;  %s643_s11 = inlined_call_operand.vmem [shape: f32[16,16], index: 11, kind: input, shape index: {}]  }
   0x1   :  { %438 = vset.pattern.permute.xlu0 %v467_v0  ;;  %v49_v1 = vld [vmem:[%s630_s2 + $0x8] sm:$0xff]  ;;  %v44_v3 = vld [vmem:[%s631_s0] sm:$0xff]  ;;  %439 = vset.pattern.permute.xlu1 %v467_v0 }
   0x2   :  { %v45_v2 = vld [vmem:[%s631_s0 + $0x8] sm:$0xff]  ;;  %57 = vperm.xlu0 %438, %v49_v1   ;;  %v46_v4 = vld [vmem:[%s632_s1] sm:$0xff]  ;;  %440 = vset.pattern.permute.xlu2 %v467_v0 }
   0x3   :  { %81 = vmatpush.msra.mxu0 %v45_v2  ;;  %v48_v5 = vld [vmem:[%s630_s2] sm:$0xff]  ;;  %v47_v6 = vld [vmem:[%s632_s1 + $0x8] sm:$0xff] }
   0x4   :  { %v290_v7 = vld [vmem:[%s633_s10 + $0x8] sm:$0xff]  ;;  %v135_v9 = vld [vmem:[%s635_s4] sm:$0xff] }
   0x5   :  { %82 = vmatpush.msra.mxu0 %v44_v3  ;;  %v377_v8 = vld [vmem:[%s634_s12 + $0x8] sm:$0xff]  ;;  %138 = vperm.xlu1 %439, %v135_v9   ;;  %v289_v28 = vld [vmem:[%s633_s10] sm:$0xff] }
   0x6   :  { %425 = vmatmul.msk.f32.vlgmr.msra.gmra.mxu0 %vm60_vm0, %v46_v4  ;;  %v189_v24 = vld [vmem:[%s636_s6 + $0x8] sm:$0xff]  ;;  %v134_v54 = vld [vmem:[%s637_s3] sm:$0xff] }
   0x7   :  { %v188_v63 = vld [vmem:[%s636_s6] sm:$0xff] }
   0x8   :  { %192 = vperm.xlu2 %440, %v188_v63   ;;  %v236_v1 = vld [vmem:[%s638_s8] sm:$0xff] }
   0xa   :  { %52 = vperm.xlu0 %438, %v48_v5  }
   0xd   :  { %197 = vperm.xlu1 %439, %v189_v24  }
   0xe   :  { %426 = vmatmul.msk.f32.gmra.mxu0 %vm60_vm0, %v47_v6  ;;  %v376_v6 = vld [vmem:[%s634_s12] sm:$0xff] }
  0x10   :  { %239 = vperm.xlu2 %440, %v236_v1  }
  0x12   :  { %298 = vperm.xlu0 %438, %v290_v7  }
  0x15   :  { %293 = vperm.xlu1 %439, %v289_v28   ;;  %v235_v28 = vld [vmem:[%s641_s7] sm:$0xff] }
  0x18   :  { %380 = vperm.xlu2 %440, %v376_v6  }
  0x1a   :  { %385 = vperm.xlu0 %438, %v377_v8  }
  0x74   :  { %v58_v10 = vpop.permute.xlu0 %57 }
  0x77   :  { %v139_v55 = vpop.permute.xlu1 %138 }
  0x7c   :  { %v53_v11 = vpop.permute.xlu0 %52 }
  0x83   :  { %v84_v12 = vpop.f32.mrf.mxu0 }
  0x84   :  { %v85_v13 = vadd.f32 %v84_v12, %v53_v11 }
  0x86   :  { %v90_v14 = vmin.f32 %v85_v13, 20.0 }
  0x88   :  { %v92_v15 = vmul.f32 1.442695, %v90_v14 }
  0x8a   :  { %441 = vpow2.f32 %v92_v15  ;;  %v186_v15 = vld [vmem:[%s639_s5] sm:$0xff] }
  0x8b   :  { %v87_v16 = vpop.f32.mrf.mxu0 }
  0x8c   :  { %v88_v17 = vadd.f32 %v87_v16, %v58_v10  ;;  %v187_v16 = vld [vmem:[%s639_s5 + $0x8] sm:$0xff] }
  0x8e   :  { %v91_v18 = vmin.f32 %v88_v17, 20.0 }
  0x90   :  { %v442_v19 = vpop.eup %441  ;;  %v94_v20 = vmul.f32 1.442695, %v91_v18 }
  0x91   :  { %v96_v21 = vadd.f32 2.0, %v442_v19 }
  0x92   :  { %443 = vpow2.f32 %v94_v20  ;;  %v198_v20 = vpop.permute.xlu1 %197 }
  0x93   :  { %v98_v22 = vmul.f32 %v442_v19, %v96_v21 }
  0x95   :  { %v102_v23 = vadd.f32 2.0, %v98_v22  ;;  %v100_v51 = vmul.f32 %v98_v22, %v85_v13 }
  0x97   :  { %445 = vrcp.f32 %v102_v23  ;;  %vm109_vm2 = vweird.f32 %v102_v23  ;;  %v115_v39 = vand.u32 2147483648, %v102_v23  ;;  %v113_v42 = vand.u32 2147483647, %v102_v23 }
  0x98   :  { %v444_v25 = vpop.eup %443 }
  0x99   :  { %v97_v26 = vadd.f32 2.0, %v444_v25  ;;  %v116_v46 = vor.u32 1.1754944e-38, %v115_v39  ;;  %vm114_vm8 = vcmp.eq.f32.partialorder %v113_v42, 8.507059e+37 }
  0x9b   :  { %v99_v27 = vmul.f32 %v444_v25, %v97_v26 }
  0x9d   :  { %v446_v29 = vpop.eup %445  ;;  %v103_v30 = vadd.f32 2.0, %v99_v27  ;;  %v101_v47 = vmul.f32 %v99_v27, %v88_v17  ;;  %v193_v17 = vpop.permute.xlu2 %192 }
  0x9e   :  { %v105_v31 = vmul.f32 %v446_v29, %v102_v23  ;;  %vm110_vm1 = vweird.f32 %v446_v29 }
  0x9f   :  { %447 = vrcp.f32 %v103_v30  ;;  %v130_v38 = vand.u32 2147483648, %v103_v30  ;;  %v128_v41 = vand.u32 2147483647, %v103_v30  ;;  %vm111_vm4 = vmor %vm109_vm2, %vm110_vm1  ;;  %vm124_vm5 = vweird.f32 %v103_v30 }
  0xa0   :  { %v106_v32 = vsub.f32 1.0, %v105_v31 }
  0xa1   :  { %v131_v45 = vor.u32 1.1754944e-38, %v130_v38  ;;  %vm129_vm7 = vcmp.eq.f32.partialorder %v128_v41, 8.507059e+37 }
  0xa2   :  { %v107_v33 = vmul.f32 %v446_v29, %v106_v32 }
  0xa4   :  { %v108_v37 = vadd.f32 %v446_v29, %v107_v33 }
  0xa5   :  { %v448_v34 = vpop.eup %447 }
  0xa6   :  { %v120_v35 = vmul.f32 %v448_v34, %v103_v30  ;;  %vm125_vm3 = vweird.f32 %v448_v34  ;;  %v112_v44 = vsel %vm111_vm4, %v446_v29, %v108_v37  ;;  %v240_v29 = vpop.permute.xlu2 %239 }
  0xa7   :  { %vm126_vm6 = vmor %vm124_vm5, %vm125_vm3  ;;  %v117_v50 = vsel %vm114_vm8, %v116_v46, %v112_v44 }
  0xa8   :  { %v121_v36 = vsub.f32 1.0, %v120_v35  ;;  %v118_v53 = vmul.f32 %v117_v50, %v100_v51  ;;  %v287_v50 = vld [vmem:[%s642_s9] sm:$0xff]  ;;  %v288_v51 = vld [vmem:[%s642_s9 + $0x8] sm:$0xff] }
  0xaa   :  { %v122_v40 = vmul.f32 %v448_v34, %v121_v36 }
  0xac   :  { %v123_v43 = vadd.f32 %v448_v34, %v122_v40 }
  0xae   :  { %v127_v48 = vsel %vm126_vm6, %v448_v34, %v123_v43 }
  0xaf   :  { %v132_v49 = vsel %vm129_vm7, %v131_v45, %v127_v48 }
  0xb0   :  { %v133_v52 = vmul.f32 %v132_v49, %v101_v47 }
  0xb2   :  { %158 = vmatpush.msra.mxu1 %v133_v52  ;;  %v294_v52 = vpop.permute.xlu1 %293 }
  0xb4   :  { %159 = vmatpush.msra.mxu1 %v118_v53 }
  0xb5   :  { %427 = vmatmul.msk.f32.vlgmr.msra.gmra.mxu1 %vm60_vm0, %v134_v54 }
 0x132   :  { %v161_v56 = vpop.f32.mrf.mxu1 }
 0x133   :  { %v162_v57 = vadd.f32 %v161_v56, %v139_v55 }
 0x135   :  { %v164_v58 = vmin.f32 %v162_v57, 20.0 }
 0x137   :  { %v165_v59 = vmul.f32 1.442695, %v164_v58 }
 0x139   :  { %449 = vpow2.f32 %v165_v59 }
 0x13f   :  { %v450_v60 = vpop.eup %449 }
 0x140   :  { %v167_v61 = vadd.f32 2.0, %v450_v60 }
 0x142   :  { %v168_v62 = vmul.f32 %v450_v60, %v167_v61 }
 0x144   :  { %v170_v0 = vadd.f32 2.0, %v168_v62  ;;  %v169_v11 = vmul.f32 %v168_v62, %v162_v57  ;;  %v299_v57 = vpop.permute.xlu0 %298 }
 0x146   :  { %451 = vrcp.f32 %v170_v0  ;;  %v182_v5 = vand.u32 2147483648, %v170_v0  ;;  %v180_v8 = vand.u32 2147483647, %v170_v0  ;;  %vm176_vm10 = vweird.f32 %v170_v0 }
 0x148   :  { %v183_v10 = vor.u32 1.1754944e-38, %v182_v5  ;;  %vm181_vm12 = vcmp.eq.f32.partialorder %v180_v8, 8.507059e+37 }
 0x14c   :  { %v452_v2 = vpop.eup %451 }
 0x14d   :  { %v172_v3 = vmul.f32 %v452_v2, %v170_v0  ;;  %vm177_vm9 = vweird.f32 %v452_v2 }
 0x14e   :  { %vm178_vm11 = vmor %vm176_vm10, %vm177_vm9 }
 0x14f   :  { %v173_v4 = vsub.f32 1.0, %v172_v3 }
 0x151   :  { %v174_v7 = vmul.f32 %v452_v2, %v173_v4 }
 0x153   :  { %v175_v9 = vadd.f32 %v452_v2, %v174_v7 }
 0x155   :  { %v179_v12 = vsel %vm178_vm11, %v452_v2, %v175_v9 }
 0x156   :  { %v184_v13 = vsel %vm181_vm12, %v183_v10, %v179_v12 }
 0x157   :  { %v185_v14 = vmul.f32 %v184_v13, %v169_v11 }
 0x159   :  { %222 = vmatpush.msra.mxu2 %v185_v14 }
 0x15a   :  { %428 = vmatmul.msk.f32.vlgmr.msra.gmra.mxu2 %vm200_vm13, %v186_v15 }
 0x162   :  { %429 = vmatmul.msk.f32.gmra.mxu2 %vm200_vm13, %v187_v16 }
 0x1dd   :  { %v224_v18 = vpop.f32.mrf.mxu2 }
 0x1de   :  { %v225_v19 = vadd.f32 %v224_v18, %v193_v17 }
 0x1e0   :  { %419 = vst.msk [vmem:[%s640_s13 + $0x10] sm:$0xff] %vm200_vm13, %v225_v19 }
 0x1e5   :  { %v227_v21 = vpop.f32.mrf.mxu2 }
 0x1e6   :  { %v228_v22 = vadd.f32 %v227_v21, %v198_v20 }
 0x1e8   :  { %v230_v23 = vmul.f32 0.5, %v228_v22  ;;  %420 = vst.msk [vmem:[%s640_s13 + $0x18] sm:$0xff] %vm200_vm13, %v228_v22 }
 0x1ea   :  { %v231_v24 = vmul.f32 1.442695, %v230_v23 }
 0x1ec   :  { %453 = vpow2.f32 %v231_v24 }
 0x1f2   :  { %v454_v25 = vpop.eup %453 }
 0x1f3   :  { %v233_v26 = vmul.f32 %v454_v25, %v225_v19 }
 0x1f5   :  { %v234_v27 = vadd.f32 %v233_v26, %v225_v19 }
 0x1f7   :  { %260 = vmatpush.msra.mxu3 %v234_v27 }
 0x1f8   :  { %430 = vmatmul.msk.f32.vlgmr.msra.gmra.mxu3 %vm200_vm13, %v235_v28 }
 0x27b   :  { %v262_v30 = vpop.f32.mrf.mxu3 }
 0x27c   :  { %v263_v31 = vadd.f32 %v262_v30, %v240_v29  ;;  %v374_v30 = vld [vmem:[%s643_s11] sm:$0xff] }
 0x27e   :  { %v265_v32 = vmin.f32 %v263_v31, 20.0 }
 0x280   :  { %v266_v33 = vmul.f32 1.442695, %v265_v32  ;;  %v381_v32 = vpop.permute.xlu2 %380 }
 0x282   :  { %455 = vpow2.f32 %v266_v33 }
 0x288   :  { %v456_v34 = vpop.eup %455 }
 0x289   :  { %v268_v35 = vadd.f32 2.0, %v456_v34 }
 0x28b   :  { %v269_v36 = vmul.f32 %v456_v34, %v268_v35  ;;  %v386_v35 = vpop.permute.xlu0 %385 }
 0x28d   :  { %v271_v37 = vadd.f32 2.0, %v269_v36  ;;  %v270_v46 = vmul.f32 %v269_v36, %v263_v31  ;;  %v375_v31 = vld [vmem:[%s643_s11 + $0x8] sm:$0xff] }
 0x28f   :  { %457 = vrcp.f32 %v271_v37  ;;  %v283_v41 = vand.u32 2147483648, %v271_v37  ;;  %v281_v43 = vand.u32 2147483647, %v271_v37  ;;  %vm277_vm15 = vweird.f32 %v271_v37 }
 0x291   :  { %v284_v45 = vor.u32 1.1754944e-38, %v283_v41  ;;  %vm282_vm2 = vcmp.eq.f32.partialorder %v281_v43, 8.507059e+37 }
 0x295   :  { %v458_v38 = vpop.eup %457 }
 0x296   :  { %v273_v39 = vmul.f32 %v458_v38, %v271_v37  ;;  %vm278_vm14 = vweird.f32 %v458_v38 }
 0x297   :  { %vm279_vm1 = vmor %vm277_vm15, %vm278_vm14 }
 0x298   :  { %v274_v40 = vsub.f32 1.0, %v273_v39 }
 0x29a   :  { %v275_v42 = vmul.f32 %v458_v38, %v274_v40 }
 0x29c   :  { %v276_v44 = vadd.f32 %v458_v38, %v275_v42 }
 0x29e   :  { %v280_v47 = vsel %vm279_vm1, %v458_v38, %v276_v44 }
 0x29f   :  { %v285_v48 = vsel %vm282_vm2, %v284_v45, %v280_v47 }
 0x2a0   :  { %v286_v49 = vmul.f32 %v285_v48, %v270_v46 }
 0x2a2   :  { %322 = vmatpush.msrb.mxu3 %v286_v49 }
 0x2a3   :  { %431 = vmatmul.msk.f32.vlgmr.msrb.gmra.mxu3 %vm200_vm13, %v287_v50 }
 0x2ab   :  { %432 = vmatmul.msk.f32.gmra.mxu3 %vm200_vm13, %v288_v51 }
 0x326   :  { %v324_v53 = vpop.f32.mrf.mxu3 }
 0x327   :  { %v325_v54 = vadd.f32 %v324_v53, %v294_v52 }
 0x329   :  { %v330_v55 = vmin.f32 %v325_v54, 20.0 }
 0x32b   :  { %v332_v56 = vmul.f32 1.442695, %v330_v55 }
 0x32d   :  { %459 = vpow2.f32 %v332_v56 }
 0x32e   :  { %v327_v58 = vpop.f32.mrf.mxu3 }
 0x32f   :  { %v328_v59 = vadd.f32 %v327_v58, %v299_v57 }
 0x331   :  { %v331_v60 = vmin.f32 %v328_v59, 20.0 }
 0x333   :  { %v460_v61 = vpop.eup %459  ;;  %v334_v62 = vmul.f32 1.442695, %v331_v60 }
 0x334   :  { %v336_v63 = vadd.f32 2.0, %v460_v61 }
 0x335   :  { %461 = vpow2.f32 %v334_v62 }
 0x336   :  { %v338_v0 = vmul.f32 %v460_v61, %v336_v63 }
 0x338   :  { %v342_v1 = vadd.f32 2.0, %v338_v0  ;;  %v340_v27 = vmul.f32 %v338_v0, %v325_v54 }
 0x33a   :  { %463 = vrcp.f32 %v342_v1  ;;  %vm349_vm4 = vweird.f32 %v342_v1  ;;  %v355_v15 = vand.u32 2147483648, %v342_v1  ;;  %v353_v18 = vand.u32 2147483647, %v342_v1 }
 0x33b   :  { %v462_v2 = vpop.eup %461 }
 0x33c   :  { %v337_v3 = vadd.f32 2.0, %v462_v2  ;;  %v356_v22 = vor.u32 1.1754944e-38, %v355_v15  ;;  %vm354_vm10 = vcmp.eq.f32.partialorder %v353_v18, 8.507059e+37 }
 0x33e   :  { %v339_v4 = vmul.f32 %v462_v2, %v337_v3 }
 0x340   :  { %v464_v5 = vpop.eup %463  ;;  %v343_v6 = vadd.f32 2.0, %v339_v4  ;;  %v341_v23 = vmul.f32 %v339_v4, %v328_v59 }
 0x341   :  { %v345_v7 = vmul.f32 %v464_v5, %v342_v1  ;;  %vm350_vm3 = vweird.f32 %v464_v5 }
 0x342   :  { %465 = vrcp.f32 %v343_v6  ;;  %v370_v14 = vand.u32 2147483648, %v343_v6  ;;  %v368_v17 = vand.u32 2147483647, %v343_v6  ;;  %vm351_vm6 = vmor %vm349_vm4, %vm350_vm3  ;;  %vm364_vm7 = vweird.f32 %v343_v6 }
 0x343   :  { %v346_v8 = vsub.f32 1.0, %v345_v7 }
 0x344   :  { %v371_v21 = vor.u32 1.1754944e-38, %v370_v14  ;;  %vm369_vm9 = vcmp.eq.f32.partialorder %v368_v17, 8.507059e+37 }
 0x345   :  { %v347_v9 = vmul.f32 %v464_v5, %v346_v8 }
 0x347   :  { %v348_v13 = vadd.f32 %v464_v5, %v347_v9 }
 0x348   :  { %v466_v10 = vpop.eup %465 }
 0x349   :  { %v360_v11 = vmul.f32 %v466_v10, %v343_v6  ;;  %vm365_vm5 = vweird.f32 %v466_v10  ;;  %v352_v20 = vsel %vm351_vm6, %v464_v5, %v348_v13 }
 0x34a   :  { %vm366_vm8 = vmor %vm364_vm7, %vm365_vm5  ;;  %v357_v26 = vsel %vm354_vm10, %v356_v22, %v352_v20 }
 0x34b   :  { %v361_v12 = vsub.f32 1.0, %v360_v11  ;;  %v358_v29 = vmul.f32 %v357_v26, %v340_v27 }
 0x34d   :  { %v362_v16 = vmul.f32 %v466_v10, %v361_v12 }
 0x34f   :  { %v363_v19 = vadd.f32 %v466_v10, %v362_v16 }
 0x351   :  { %v367_v24 = vsel %vm366_vm8, %v466_v10, %v363_v19 }
 0x352   :  { %v372_v25 = vsel %vm369_vm9, %v371_v21, %v367_v24 }
 0x353   :  { %v373_v28 = vmul.f32 %v372_v25, %v341_v23 }
 0x355   :  { %408 = vmatpush.msrb.mxu1 %v373_v28  ;;  %435 = vmatpush.msrb.mxu2 %v373_v28 }
 0x357   :  { %409 = vmatpush.msrb.mxu1 %v358_v29  ;;  %436 = vmatpush.msrb.mxu2 %v358_v29 }
 0x358   :  { %433 = vmatmul.msk.f32.vlgmr.msrb.gmra.mxu1 %vm60_vm0, %v374_v30  ;;  %434 = vmatmul.msk.f32.vlgmr.msrb.gmra.mxu2 %vm60_vm0, %v375_v31 }
 0x3d5   :  { %v411_v33 = vpop.f32.mrf.mxu1 }
 0x3d6   :  { %v412_v34 = vadd.f32 %v411_v33, %v381_v32 }
 0x3d8   :  { %417 = vst.msk [vmem:[%s640_s13] sm:$0xff] %vm200_vm13, %v412_v34 }
 0x3db   :  { %v414_v36 = vpop.f32.mrf.mxu2 }
 0x3dc   :  { %v415_v37 = vadd.f32 %v414_v36, %v386_v35 }
 0x3de   :  { %418 = vst.msk [vmem:[%s640_s13 + $0x8] sm:$0xff] %vm200_vm13, %v415_v37 }

</bundles_post_ra>
